<compile_context>
chip_gen: v7x
topology: tpu7x:2x2x1
jax: 0.10.0
libtpu: 0.0.40
codegen_flags: <defaults>
</compile_context>

<pallas_src>
from functools import partial

import jax
import jax.numpy as jnp
from jax.experimental import pallas as pl
from jax.experimental.pallas import tpu as pltpu


def _round_up(x, m):
    return (x + m - 1) // m * m


def critic_kernel(s_ref, a_ref, w1s_ref, w1a_ref, b1_ref, w2_ref, b2_ref,
                  w3_ref, b3_ref, out_ref):
    # Fused-concat first layer: two partial matmuls into one f32 accumulator.
    h1 = jnp.dot(s_ref[...], w1s_ref[...], preferred_element_type=jnp.float32)
    h1 = h1 + jnp.dot(a_ref[...], w1a_ref[...],
                      preferred_element_type=jnp.float32)
    h1 = jnp.maximum(h1 + b1_ref[...], 0.0)                        # (TB, fc1)

    h2 = jnp.dot(h1, w2_ref[...], preferred_element_type=jnp.float32)
    h2 = jnp.maximum(h2 + b2_ref[...], 0.0)                        # (TB, fc2)

    # Output layer (width 1): contract the fc2 axis of the (1, fc2) row with
    # the fc2 axis of h2 -> lane-dense (1, TB) result (batch along lanes).
    q = jax.lax.dot_general(w3_ref[...], h2, (((1,), (1,)), ((), ())),
                            preferred_element_type=jnp.float32)    # (1, TB)
    out_ref[...] = (q + b3_ref[...]).astype(out_ref.dtype)


@partial(jax.jit, static_argnames=("tile_b",))
def critic_forward(state, actions, params, tile_b=1024):
    """state: (B, in_dims), actions: (B, no_actions) -> q: (B, 1) float32."""
    w1s, w1a, b1, w2, b2, w3, b3 = params
    B, in_dims = state.shape
    no_actions = actions.shape[1]
    fc1 = w1s.shape[1]
    fc2 = w2.shape[1]

    state = state.astype(jnp.float32)
    actions = actions.astype(jnp.float32)

    # Batch tile: multiple of 8 sublanes, capped at `tile_b` rows (v7x-safe).
    tb = min(tile_b, _round_up(B, 8))
    b_pad = _round_up(B, tb)
    if b_pad != B:
        pad = b_pad - B
        state = jnp.pad(state, ((0, pad), (0, 0)))
        actions = jnp.pad(actions, ((0, pad), (0, 0)))

    grid = (b_pad // tb,)
    resident = lambda i: (0, 0)   # weights / biases: same block every step

    q_row = pl.pallas_call(
        critic_kernel,
        out_shape=jax.ShapeDtypeStruct((1, b_pad), jnp.float32),
        grid=grid,
        in_specs=[
            pl.BlockSpec((tb, in_dims), lambda i: (i, 0)),       # state tile
            pl.BlockSpec((tb, no_actions), lambda i: (i, 0)),    # action tile
            pl.BlockSpec((in_dims, fc1), resident),              # W1_state
            pl.BlockSpec((no_actions, fc1), resident),           # W1_act
            pl.BlockSpec((1, fc1), resident),                    # b1
            pl.BlockSpec((fc1, fc2), resident),                  # W2
            pl.BlockSpec((1, fc2), resident),                    # b2
            pl.BlockSpec((1, fc2), resident),                    # W3 (row)
            pl.BlockSpec((1, 1), resident),                      # b3
        ],
        out_specs=pl.BlockSpec((1, tb), lambda i: (0, i)),       # lane-dense q
        compiler_params=pltpu.CompilerParams(
            dimension_semantics=("parallel",)),
    )(state, actions, w1s, w1a, b1, w2, b2, w3, b3)

    # (1, B_pad) lane-dense slab -> (B, 1)
    return q_row.reshape(b_pad, 1)[:B]


def init_params(key, in_dims, no_actions, fc1_units, fc2_units):
    """PyTorch nn.Linear-style init: uniform(-1/sqrt(fan_in), 1/sqrt(fan_in)).

    Layout for the kernel:
      W1_state (in_dims, fc1), W1_act (no_actions, fc1)  [= W1^T split]
      W2       (fc1, fc2)                                [= W2^T]
      W3       (1, fc2)                                  [= W3 row]
      biases   (1, out_features); b3 is (1, 1)
    """
    def linear(k, fan_in, fan_out):
        kw, kb = jax.random.split(k)
        bound = 1.0 / jnp.sqrt(jnp.float32(fan_in))
        w = jax.random.uniform(kw, (fan_in, fan_out), jnp.float32, -bound, bound)
        b = jax.random.uniform(kb, (1, fan_out), jnp.float32, -bound, bound)
        return w, b

    k1, k2, k3 = jax.random.split(key, 3)
    d_in = in_dims + no_actions
    w1, b1 = linear(k1, d_in, fc1_units)
    w1s, w1a = w1[:in_dims], w1[in_dims:]        # split for fused-concat kernel
    w2, b2 = linear(k2, fc1_units, fc2_units)
    w3_col, b3 = linear(k3, fc2_units, 1)        # (fc2, 1), (1, 1)
    w3 = w3_col.T                                # (1, fc2) row
    return (w1s, w1a, b1, w2, b2, w3, b3)


def critic_reference(state, actions, params):
    """Pure-JAX reference of the same math (matches PyTorch forward)."""
    w1s, w1a, b1, w2, b2, w3, b3 = params
    x = jnp.concatenate([state, actions], axis=1)
    w1 = jnp.concatenate([w1s, w1a], axis=0)
    h = jnp.maximum(x @ w1 + b1, 0.0)
    h = jnp.maximum(h @ w2 + b2, 0.0)
    return h @ w3.T + b3


if __name__ == "__main__":
    key = jax.random.PRNGKey(0)
    k_params, k_state, k_actions = jax.random.split(key, 3)

    in_dims = 8          # module's in_dims[0]
    no_actions = 2
    fc1_units = 256
    fc2_units = 256

    params = init_params(k_params, in_dims, no_actions, fc1_units, fc2_units)

    # Small demo batch (single batch tile).
    batch = 4
    state = jax.random.normal(k_state, (batch, in_dims), jnp.float32)
    actions = jax.random.normal(k_actions, (batch, no_actions), jnp.float32)
    q = jax.block_until_ready(critic_forward(state, actions, params))
    ref = critic_reference(state, actions, params)
    assert q.shape == (batch, 1)
    assert jnp.allclose(q, ref, atol=2e-5, rtol=1e-5)

    # Multi-tile batch (exercises the grid, batch padding and final slice).
    batch2 = 1030
    k_s2, k_a2 = jax.random.split(jax.random.PRNGKey(1))
    state2 = jax.random.normal(k_s2, (batch2, in_dims), jnp.float32)
    actions2 = jax.random.normal(k_a2, (batch2, no_actions), jnp.float32)
    q2 = jax.block_until_ready(critic_forward(state2, actions2, params))
    ref2 = critic_reference(state2, actions2, params)
    assert q2.shape == (batch2, 1)
    assert jnp.allclose(q2, ref2, atol=1e-4, rtol=1e-5)

    print("KERNEL_OK")
</pallas_src>

<mosaic_0001>
module attributes {stable_mosaic.version = 11 : i64} {
  func.func @critic_kernel(%arg0: i32, %arg1: memref<8x8xf32, #tpu.memory_space<vmem>>, %arg2: memref<8x2xf32, #tpu.memory_space<vmem>>, %arg3: memref<8x256xf32, #tpu.memory_space<vmem>>, %arg4: memref<2x256xf32, #tpu.memory_space<vmem>>, %arg5: memref<1x256xf32, #tpu.memory_space<vmem>>, %arg6: memref<256x256xf32, #tpu.memory_space<vmem>>, %arg7: memref<1x256xf32, #tpu.memory_space<vmem>>, %arg8: memref<1x256xf32, #tpu.memory_space<vmem>>, %arg9: memref<1x1xf32, #tpu.memory_space<vmem>>, %arg10: memref<1x8xf32, #tpu.memory_space<vmem>>) attributes {dimension_semantics = [#tpu.dimension_semantics<parallel>], iteration_bounds = array<i64: 1>, scalar_prefetch = 0 : i64, scratch_operands = 0 : i64, tpu.core_type = #tpu.core_type<tc>, window_params = [{transform_indices = @transform_0, window_bounds = array<i64: 8, 8>}, {transform_indices = @transform_1, window_bounds = array<i64: 8, 2>}, {pipeline_mode = #tpu.pipeline_mode<synchronous>, transform_indices = @transform_2, window_bounds = array<i64: 8, 256>}, {pipeline_mode = #tpu.pipeline_mode<synchronous>, transform_indices = @transform_3, window_bounds = array<i64: 2, 256>}, {pipeline_mode = #tpu.pipeline_mode<synchronous>, transform_indices = @transform_4, window_bounds = array<i64: 1, 256>}, {pipeline_mode = #tpu.pipeline_mode<synchronous>, transform_indices = @transform_5, window_bounds = array<i64: 256, 256>}, {pipeline_mode = #tpu.pipeline_mode<synchronous>, transform_indices = @transform_6, window_bounds = array<i64: 1, 256>}, {pipeline_mode = #tpu.pipeline_mode<synchronous>, transform_indices = @transform_7, window_bounds = array<i64: 1, 256>}, {pipeline_mode = #tpu.pipeline_mode<synchronous>, transform_indices = @transform_8, window_bounds = array<i64: 1, 1>}, {transform_indices = @transform_9, window_bounds = array<i64: 1, 8>}]} {
    %c0 = arith.constant 0 : index
    %c0_0 = arith.constant 0 : index
    %0 = vector.load %arg1[%c0, %c0_0] : memref<8x8xf32, #tpu.memory_space<vmem>>, vector<8x8xf32>
    %c0_1 = arith.constant 0 : index
    %c0_2 = arith.constant 0 : index
    %1 = vector.load %arg3[%c0_1, %c0_2] : memref<8x256xf32, #tpu.memory_space<vmem>>, vector<8x256xf32>
    %cst = arith.constant dense<0.000000e+00> : vector<8x256xf32>
    %2 = tpu.matmul %0, %1, %cst {dimension_numbers = #tpu.dot_dimension_numbers<[1], [0], [0], [1], [0, 0, 1, 1], [], []>} : vector<8x8xf32>, vector<8x256xf32>, vector<8x256xf32> -> vector<8x256xf32>
    %c0_3 = arith.constant 0 : index
    %c0_4 = arith.constant 0 : index
    %3 = vector.load %arg2[%c0_3, %c0_4] : memref<8x2xf32, #tpu.memory_space<vmem>>, vector<8x2xf32>
    %c0_5 = arith.constant 0 : index
    %c0_6 = arith.constant 0 : index
    %4 = vector.load %arg4[%c0_5, %c0_6] : memref<2x256xf32, #tpu.memory_space<vmem>>, vector<2x256xf32>
    %cst_7 = arith.constant dense<0.000000e+00> : vector<8x256xf32>
    %5 = tpu.matmul %3, %4, %cst_7 {dimension_numbers = #tpu.dot_dimension_numbers<[1], [0], [0], [1], [0, 0, 1, 1], [], []>} : vector<8x2xf32>, vector<2x256xf32>, vector<8x256xf32> -> vector<8x256xf32>
    %6 = arith.addf %2, %5 : vector<8x256xf32>
    %c0_8 = arith.constant 0 : index
    %c0_9 = arith.constant 0 : index
    %7 = vector.load %arg5[%c0_8, %c0_9] : memref<1x256xf32, #tpu.memory_space<vmem>>, vector<1x256xf32>
    %8 = vector.broadcast %7 : vector<1x256xf32> to vector<8x256xf32>
    %9 = arith.addf %6, %8 : vector<8x256xf32>
    %cst_10 = arith.constant 0.000000e+00 : f32
    %10 = vector.broadcast %cst_10 : f32 to vector<8x256xf32>
    %11 = arith.maximumf %9, %10 : vector<8x256xf32>
    %c0_11 = arith.constant 0 : index
    %c0_12 = arith.constant 0 : index
    %12 = vector.load %arg6[%c0_11, %c0_12] : memref<256x256xf32, #tpu.memory_space<vmem>>, vector<256x256xf32>
    %cst_13 = arith.constant dense<0.000000e+00> : vector<8x256xf32>
    %13 = tpu.matmul %11, %12, %cst_13 {dimension_numbers = #tpu.dot_dimension_numbers<[1], [0], [0], [1], [0, 0, 1, 1], [], []>} : vector<8x256xf32>, vector<256x256xf32>, vector<8x256xf32> -> vector<8x256xf32>
    %c0_14 = arith.constant 0 : index
    %c0_15 = arith.constant 0 : index
    %14 = vector.load %arg7[%c0_14, %c0_15] : memref<1x256xf32, #tpu.memory_space<vmem>>, vector<1x256xf32>
    %15 = vector.broadcast %14 : vector<1x256xf32> to vector<8x256xf32>
    %16 = arith.addf %13, %15 : vector<8x256xf32>
    %cst_16 = arith.constant 0.000000e+00 : f32
    %17 = vector.broadcast %cst_16 : f32 to vector<8x256xf32>
    %18 = arith.maximumf %16, %17 : vector<8x256xf32>
    %c0_17 = arith.constant 0 : index
    %c0_18 = arith.constant 0 : index
    %19 = vector.load %arg8[%c0_17, %c0_18] : memref<1x256xf32, #tpu.memory_space<vmem>>, vector<1x256xf32>
    %cst_19 = arith.constant dense<0.000000e+00> : vector<1x8xf32>
    %20 = tpu.matmul %19, %18, %cst_19 {dimension_numbers = #tpu.dot_dimension_numbers<[1], [1], [0], [0], [0, 0, 1, 0], [], []>} : vector<1x256xf32>, vector<8x256xf32>, vector<1x8xf32> -> vector<1x8xf32>
    %c0_20 = arith.constant 0 : index
    %c0_21 = arith.constant 0 : index
    %21 = vector.load %arg9[%c0_20, %c0_21] : memref<1x1xf32, #tpu.memory_space<vmem>>, vector<1x1xf32>
    %22 = vector.broadcast %21 : vector<1x1xf32> to vector<1x8xf32>
    %23 = arith.addf %20, %22 : vector<1x8xf32>
    %c0_22 = arith.constant 0 : index
    %c0_23 = arith.constant 0 : index
    %24 = vector.load %arg10[%c0_22, %c0_23] : memref<1x8xf32, #tpu.memory_space<vmem>>, vector<1x8xf32>
    tpu.vector_store %arg10[%c0_22, %c0_23], %23 {strides = array<i32>} : memref<1x8xf32, #tpu.memory_space<vmem>>, vector<1x8xf32>,
    return
  }
  func.func @transform_0(%arg0: i32) -> (i32, i32) {
    %c0_i32 = arith.constant 0 : i32
    %c0_i32_0 = arith.constant 0 : i32
    return %arg0, %c0_i32 : i32, i32
  }
  func.func @transform_1(%arg0: i32) -> (i32, i32) {
    %c0_i32 = arith.constant 0 : i32
    %c0_i32_0 = arith.constant 0 : i32
    return %arg0, %c0_i32 : i32, i32
  }
  func.func @transform_2(%arg0: i32) -> (i32, i32) {
    %c0_i32 = arith.constant 0 : i32
    %c0_i32_0 = arith.constant 0 : i32
    %c0_i32_1 = arith.constant 0 : i32
    return %c0_i32, %c0_i32_0 : i32, i32
  }
  func.func @transform_3(%arg0: i32) -> (i32, i32) {
    %c0_i32 = arith.constant 0 : i32
    %c0_i32_0 = arith.constant 0 : i32
    %c0_i32_1 = arith.constant 0 : i32
    return %c0_i32, %c0_i32_0 : i32, i32
  }
  func.func @transform_4(%arg0: i32) -> (i32, i32) {
    %c0_i32 = arith.constant 0 : i32
    %c0_i32_0 = arith.constant 0 : i32
    %c0_i32_1 = arith.constant 0 : i32
    return %c0_i32, %c0_i32_0 : i32, i32
  }
  func.func @transform_5(%arg0: i32) -> (i32, i32) {
    %c0_i32 = arith.constant 0 : i32
    %c0_i32_0 = arith.constant 0 : i32
    %c0_i32_1 = arith.constant 0 : i32
    return %c0_i32, %c0_i32_0 : i32, i32
  }
  func.func @transform_6(%arg0: i32) -> (i32, i32) {
    %c0_i32 = arith.constant 0 : i32
    %c0_i32_0 = arith.constant 0 : i32
    %c0_i32_1 = arith.constant 0 : i32
    return %c0_i32, %c0_i32_0 : i32, i32
  }
  func.func @transform_7(%arg0: i32) -> (i32, i32) {
    %c0_i32 = arith.constant 0 : i32
    %c0_i32_0 = arith.constant 0 : i32
    %c0_i32_1 = arith.constant 0 : i32
    return %c0_i32, %c0_i32_0 : i32, i32
  }
  func.func @transform_8(%arg0: i32) -> (i32, i32) {
    %c0_i32 = arith.constant 0 : i32
    %c0_i32_0 = arith.constant 0 : i32
    %c0_i32_1 = arith.constant 0 : i32
    return %c0_i32, %c0_i32_0 : i32, i32
  }
  func.func @transform_9(%arg0: i32) -> (i32, i32) {
    %c0_i32 = arith.constant 0 : i32
    %c0_i32_0 = arith.constant 0 : i32
    return %c0_i32, %arg0 : i32, i32
  }
}

</mosaic_0001>

<bundles_post_ra>
// kernel: critic_forward.1
= control target key start
LH: loop header
LB: loop body
LE: loop exit
PB: predicated region body
PF: predicated region fallthrough
CT: control target
= control target key end

     0   :  { %s679_s0 = inlined_call_operand.vmem [shape: f32[8,8], index: 0, kind: input, shape index: {}]   ;;  %s680_s1 = inlined_call_operand.vmem [shape: f32[8,2], index: 1, kind: input, shape index: {}]   ;;  %s681_s2 = inlined_call_operand.vmem [shape: f32[8,256], index: 2, kind: input, shape index: {}]   ;;  %s682_s3 = inlined_call_operand.vmem [shape: f32[2,256], index: 3, kind: input, shape index: {}]   ;;  %s683_s4 = inlined_call_operand.vmem [shape: f32[1,256], index: 4, kind: input, shape index: {}]   ;;  %s684_s5 = inlined_call_operand.hbm [shape: f32[256,256], index: 5, kind: input, shape index: {}]   ;;  %s685_s6 = inlined_call_operand.vmem [shape: f32[1,256], index: 6, kind: input, shape index: {}]   ;;  %s686_s7 = inlined_call_operand.vmem [shape: f32[1,256], index: 7, kind: input, shape index: {}]   ;;  %s687_s8 = inlined_call_operand.<no memory space> [shape: f32[1,1], index: 8, kind: input, shape index: {}]   ;;  %s688_s9 = inlined_call_operand.vmem [shape: f32[1,8], index: 9, kind: output, shape index: {}]  }
   0x1   :  { %v14_v0 = vstv %s687_s8 }
   0x2   :  { %15 = vst [vmem:[#allocation2] sm:$0x1] %v14_v0 }
   0x3   :  { %16 = vsyncpa [#allocation4], 0  ;;  %s582_s11 = smov [#allocation3]   ;;  %s558_s15 = scalar_lea.hbm %s684_s5, 8192 }
   0x4   :  { %s32_s12 = sshll.u32 %s582_s11, 4  ;;  %p559_p0 = scmp.ne.s32.totalorder %s684_s5, %s558_s15  ;;  %s33_s12 = int_to_ptr.vmem [resolvable:$true] %s32_s12 }
   0x5   :  { %p562_p1 = scmp.lt.u32.totalorder %s558_s15, %s684_s5 }
   0x7   :  { %p564_p2 = pnand %p562_p1, %p559_p0 }
   0x9   :  { %567 = shalt.err (!%p564_p2)
}
   0xa   :  { %s568_s8 = scalar_lea.vmem %s33_s12, 8192  ;;  %p573_p4 = scmp.lt.s32.totalorder %s33_s12, %s33_s12 }
   0xb   :  { %p569_p3 = scmp.ne.s32.totalorder %s33_s12, %s568_s8  ;;  %p574_p5 = scmp.lt.s32.totalorder %s568_s8, %s568_s8 }
   0xd   :  { %p575_p6 = por %p574_p5, %p573_p4 }
   0xf   :  { %p576_p7 = pnand %p575_p6, %p569_p3 }
  0x11   :  { %579 = shalt.err (!%p576_p7)
}
  0x12   :  { %s583_s20 = smov 256   ;;  %s584_s21 = smov 16  }
  0x13   :  { %38 = dma.hbm_to_vmem [thread:$0]  %s684_s5, 8192, %s33_s12, [#allocation4], %s583_s20, %s583_s20, %s584_s21  }
  0x14   :  { %580 = dma.done.wait [#allocation4], 8192  }
  0x15   :  { %581 = vsyncadd [#allocation4], 4294959104  ;;  %v585_v1 = vmov 0.0   ;;  %vm66_vm0 = vcmask 1041408   ;;  %v51_v4 = vld [vmem:[%s680_s1] sm:$0xff]  ;;  %v50_v5 = vld [vmem:[%s681_s2 + $0x8] sm:$0xff] }
  0x16   :  { %135 = vmatprep.mubr.f32.mxu0 %v585_v1  ;;  %v481_v2 = vld.sshfl [vmem:[%s682_s3] sm:$0x33 pattern:$0x76325410]  ;;  %v234_v6 = vld [vmem:[#allocation3 + $0x8] sm:$0xff]  ;;  %vm62_vm1 = vcmask 15360  }
  0x17   :  { %v61_v3 = vcombine.high %v481_v2, %v481_v2  ;;  %v236_v7 = vld [vmem:[#allocation3 + $0x18] sm:$0xff]  ;;  %v233_v8 = vld [vmem:[#allocation3] sm:$0xff]  ;;  %v235_v9 = vld [vmem:[#allocation3 + $0x10] sm:$0xff]  ;;  %vm142_vm2 = vcmask 64512   ;;  %vm474_vm3 = vcmask 57344  }
  0x18   :  { %v49_v10 = vld [vmem:[%s681_s2] sm:$0xff]  ;;  %v486_v11 = vpack.c.bf16 %v236_v7, %v234_v6  ;;  %v238_v12 = vld [vmem:[#allocation3 + $0x28] sm:$0xff]  ;;  %v488_v14 = vpack.c.bf16 %v235_v9, %v233_v8  ;;  %v239_v17 = vld [vmem:[#allocation3 + $0x30] sm:$0xff] }
  0x19   :  { %482 = vmatprep.subr.msk.mxu0 %vm66_vm0, %v61_v3  ;;  %v240_v13 = vld [vmem:[#allocation3 + $0x38] sm:$0xff]  ;;  %v237_v16 = vld [vmem:[#allocation3 + $0x20] sm:$0xff]  ;;  %v242_v18 = vld [vmem:[#allocation3 + $0x48] sm:$0xff] }
  0x1a   :  { %483 = vmatpush1.msk.msra.mxu0 %vm66_vm0, %v481_v2  ;;  %v490_v15 = vpack.c.bf16 %v240_v13, %v238_v12  ;;  %v244_v19 = vld [vmem:[#allocation3 + $0x58] sm:$0xff]  ;;  %487 = vmatprep.subr.bf16.mxu1 %v486_v11  ;;  %v492_v20 = vpack.c.bf16 %v239_v17, %v237_v16  ;;  %v241_v22 = vld [vmem:[#allocation3 + $0x40] sm:$0xff]  ;;  %v243_v23 = vld [vmem:[#allocation3 + $0x50] sm:$0xff] }
  0x1b   :  { %484 = vmatmul.mubr.msk.f32.vlgmr.msra.gmra.mrb[0].mxu0 %vm62_vm1, %v51_v4  ;;  %146 = vmatprep.subr.mxu0 %v50_v5  ;;  %v494_v21 = vpack.c.bf16 %v244_v19, %v242_v18  ;;  %v48_v24 = vld [vmem:[%s679_s0] sm:$0xff]  ;;  %v246_v25 = vld [vmem:[#allocation3 + $0x68] sm:$0xff]  ;;  %v496_v27 = vpack.c.bf16 %v243_v23, %v241_v22  ;;  %v247_v30 = vld [vmem:[#allocation3 + $0x70] sm:$0xff] }
  0x1c   :  { %147 = vmatpush1.msra.mxu0 %v49_v10  ;;  %210 = vmatprep.mubr.f32.mxu0 %v585_v1  ;;  %v248_v26 = vld [vmem:[#allocation3 + $0x78] sm:$0xff]  ;;  %v245_v29 = vld [vmem:[#allocation3 + $0x60] sm:$0xff]  ;;  %v250_v31 = vld [vmem:[#allocation3 + $0x88] sm:$0xff] }
  0x1d   :  { %489 = vmatpush1.bf16.msra.mxu1 %v488_v14  ;;  %v498_v28 = vpack.c.bf16 %v248_v26, %v246_v25  ;;  %v252_v32 = vld [vmem:[#allocation3 + $0x98] sm:$0xff]  ;;  %v500_v33 = vpack.c.bf16 %v247_v30, %v245_v29  ;;  %v249_v35 = vld [vmem:[#allocation3 + $0x80] sm:$0xff]  ;;  %v251_v36 = vld [vmem:[#allocation3 + $0x90] sm:$0xff] }
  0x1e   :  { %491 = vmatprep.subr.bf16.mxu1 %v490_v15  ;;  %v502_v34 = vpack.c.bf16 %v252_v32, %v250_v31  ;;  %v254_v37 = vld [vmem:[#allocation3 + $0xa8] sm:$0xff]  ;;  %v256_v38 = vld [vmem:[#allocation3 + $0xb8] sm:$0xff]  ;;  %v504_v39 = vpack.c.bf16 %v251_v36, %v249_v35  ;;  %v253_v41 = vld [vmem:[#allocation3 + $0xa0] sm:$0xff] }
  0x1f   :  { %v506_v40 = vpack.c.bf16 %v256_v38, %v254_v37  ;;  %v255_v42 = vld [vmem:[#allocation3 + $0xb0] sm:$0xff]  ;;  %v258_v43 = vld [vmem:[#allocation3 + $0xc8] sm:$0xff]  ;;  %v260_v44 = vld [vmem:[#allocation3 + $0xd8] sm:$0xff] }
  0x20   :  { %v508_v45 = vpack.c.bf16 %v255_v42, %v253_v41  ;;  %v510_v46 = vpack.c.bf16 %v260_v44, %v258_v43  ;;  %v257_v47 = vld [vmem:[#allocation3 + $0xc0] sm:$0xff]  ;;  %v259_v48 = vld [vmem:[#allocation3 + $0xd0] sm:$0xff]  ;;  %v262_v49 = vld [vmem:[#allocation3 + $0xe8] sm:$0xff] }
  0x21   :  { %493 = vmatpush1.bf16.msra.mxu1 %v492_v20  ;;  %v264_v50 = vld [vmem:[#allocation3 + $0xf8] sm:$0xff]  ;;  %v512_v51 = vpack.c.bf16 %v259_v48, %v257_v47  ;;  %v261_v53 = vld [vmem:[#allocation3 + $0xe0] sm:$0xff]  ;;  %v263_v54 = vld [vmem:[#allocation3 + $0xf0] sm:$0xff] }
  0x22   :  { %495 = vmatprep.subr.bf16.mxu1 %v494_v21  ;;  %v514_v52 = vpack.c.bf16 %v264_v50, %v262_v49  ;;  %v266_v55 = vld [vmem:[#allocation3 + $0x108] sm:$0xff]  ;;  %v268_v56 = vld [vmem:[#allocation3 + $0x118] sm:$0xff]  ;;  %v516_v57 = vpack.c.bf16 %v263_v54, %v261_v53  ;;  %v265_v59 = vld [vmem:[#allocation3 + $0x100] sm:$0xff] }
  0x23   :  { %485 = vmatmul.mubr.msk.f32.vlgmr.msra.gmra.mrb[0].mxu0 %vm142_vm2, %v48_v24  ;;  %v518_v58 = vpack.c.bf16 %v268_v56, %v266_v55  ;;  %v267_v60 = vld [vmem:[#allocation3 + $0x110] sm:$0xff]  ;;  %v270_v61 = vld [vmem:[#allocation3 + $0x128] sm:$0xff]  ;;  %v272_v62 = vld [vmem:[#allocation3 + $0x138] sm:$0xff]  ;;  %v586_v56 = vmov 0  }
  0x24   :  { %v520_v63 = vpack.c.bf16 %v267_v60, %v265_v59  ;;  %v522_v0 = vpack.c.bf16 %v272_v62, %v270_v61  ;;  %v269_v1 = vld [vmem:[#allocation3 + $0x120] sm:$0xff]  ;;  %v271_v2 = vld [vmem:[#allocation3 + $0x130] sm:$0xff]  ;;  %v274_v3 = vld [vmem:[#allocation3 + $0x148] sm:$0xff]  ;;  %557 = vset.pattern.permute.xlu0 %v586_v56 }
  0x25   :  { %497 = vmatpush1.bf16.msra.mxu1 %v496_v27  ;;  %v276_v4 = vld [vmem:[#allocation3 + $0x158] sm:$0xff]  ;;  %v524_v5 = vpack.c.bf16 %v271_v2, %v269_v1  ;;  %v273_v7 = vld [vmem:[#allocation3 + $0x140] sm:$0xff]  ;;  %v275_v8 = vld [vmem:[#allocation3 + $0x150] sm:$0xff] }
  0x26   :  { %499 = vmatprep.subr.bf16.mxu1 %v498_v28  ;;  %v526_v6 = vpack.c.bf16 %v276_v4, %v274_v3  ;;  %v278_v9 = vld [vmem:[#allocation3 + $0x168] sm:$0xff]  ;;  %v280_v10 = vld [vmem:[#allocation3 + $0x178] sm:$0xff]  ;;  %v528_v11 = vpack.c.bf16 %v275_v8, %v273_v7  ;;  %v277_v13 = vld [vmem:[#allocation3 + $0x160] sm:$0xff] }
  0x27   :  { %v530_v12 = vpack.c.bf16 %v280_v10, %v278_v9  ;;  %v279_v14 = vld [vmem:[#allocation3 + $0x170] sm:$0xff]  ;;  %v282_v15 = vld [vmem:[#allocation3 + $0x188] sm:$0xff]  ;;  %v284_v16 = vld [vmem:[#allocation3 + $0x198] sm:$0xff] }
  0x28   :  { %v532_v17 = vpack.c.bf16 %v279_v14, %v277_v13  ;;  %v534_v18 = vpack.c.bf16 %v284_v16, %v282_v15  ;;  %v281_v19 = vld [vmem:[#allocation3 + $0x180] sm:$0xff]  ;;  %v283_v20 = vld [vmem:[#allocation3 + $0x190] sm:$0xff]  ;;  %v286_v21 = vld [vmem:[#allocation3 + $0x1a8] sm:$0xff] }
  0x29   :  { %501 = vmatpush1.bf16.msra.mxu1 %v500_v33  ;;  %v288_v22 = vld [vmem:[#allocation3 + $0x1b8] sm:$0xff]  ;;  %v536_v23 = vpack.c.bf16 %v283_v20, %v281_v19  ;;  %v285_v25 = vld [vmem:[#allocation3 + $0x1a0] sm:$0xff]  ;;  %v287_v26 = vld [vmem:[#allocation3 + $0x1b0] sm:$0xff] }
  0x2a   :  { %503 = vmatprep.subr.bf16.mxu1 %v502_v34  ;;  %v538_v24 = vpack.c.bf16 %v288_v22, %v286_v21  ;;  %v290_v27 = vld [vmem:[#allocation3 + $0x1c8] sm:$0xff]  ;;  %v292_v28 = vld [vmem:[#allocation3 + $0x1d8] sm:$0xff]  ;;  %v540_v29 = vpack.c.bf16 %v287_v26, %v285_v25  ;;  %v289_v31 = vld [vmem:[#allocation3 + $0x1c0] sm:$0xff] }
  0x2b   :  { %v542_v30 = vpack.c.bf16 %v292_v28, %v290_v27  ;;  %v291_v32 = vld [vmem:[#allocation3 + $0x1d0] sm:$0xff]  ;;  %v294_v34 = vld [vmem:[#allocation3 + $0x1e8] sm:$0xff]  ;;  %v296_v35 = vld [vmem:[#allocation3 + $0x1f8] sm:$0xff] }
  0x2c   :  { %v544_v33 = vpack.c.bf16 %v291_v32, %v289_v31  ;;  %v546_v36 = vpack.c.bf16 %v296_v35, %v294_v34  ;;  %v293_v37 = vld [vmem:[#allocation3 + $0x1e0] sm:$0xff]  ;;  %v295_v38 = vld [vmem:[#allocation3 + $0x1f0] sm:$0xff]  ;;  %v383_v55 = vld [vmem:[#allocation2] sm:$0x1] }
  0x2d   :  { %505 = vmatpush1.bf16.msra.mxu1 %v504_v39  ;;  %v548_v39 = vpack.c.bf16 %v295_v38, %v293_v37  ;;  %v217_v43 = vld [vmem:[%s683_s4] sm:$0x3]  ;;  %386 = vperm.xlu0 %557, %v383_v55  }
  0x2e   :  { %507 = vmatprep.subr.bf16.mxu1 %v506_v40  ;;  %v219_v40 = vlaneseq  ;;  %v382_v53 = vld [vmem:[%s686_s7] sm:$0x3] }
  0x30   :  { %v220_v41 = vshrl.u32 %v219_v40, 7 }
  0x31   :  { %509 = vmatpush1.bf16.msra.mxu1 %v508_v45 }
  0x32   :  { %511 = vmatprep.subr.bf16.mxu1 %v510_v46  ;;  %v221_v42 = vsub.s32 0, %v220_v41  ;;  %v225_v44 = vsub.s32 1, %v220_v41 }
  0x34   :  { %v222_v45 = vrot.slane %v217_v43, %v221_v42  ;;  %v226_v46 = vrot.slane %v217_v43, %v225_v44  ;;  %v401_v54 = vrot.slane %v382_v53, %v225_v44  ;;  %v397_v2 = vrot.slane %v382_v53, %v221_v42 }
  0x35   :  { %513 = vmatpush1.bf16.msra.mxu1 %v512_v51 }
  0x36   :  { %515 = vmatprep.subr.bf16.mxu1 %v514_v52  ;;  %468 = vmatprep.mubr.f32.mxu0 %v401_v54 }
  0x39   :  { %517 = vmatpush1.bf16.msra.mxu1 %v516_v57  ;;  %v297_v57 = vld [vmem:[%s685_s6] sm:$0x3] }
  0x3a   :  { %519 = vmatprep.subr.bf16.mxu1 %v518_v58  ;;  %v302_v58 = vrot.slane %v297_v57, %v221_v42  ;;  %v306_v59 = vrot.slane %v297_v57, %v225_v44 }
  0x3d   :  { %521 = vmatpush1.bf16.msra.mxu1 %v520_v63 }
  0x3e   :  { %523 = vmatprep.subr.bf16.mxu1 %v522_v0 }
  0x41   :  { %525 = vmatpush1.bf16.msra.mxu1 %v524_v5 }
  0x42   :  { %527 = vmatprep.subr.bf16.mxu1 %v526_v6 }
  0x45   :  { %529 = vmatpush1.bf16.msra.mxu1 %v528_v11 }
  0x46   :  { %531 = vmatprep.subr.bf16.mxu1 %v530_v12 }
  0x49   :  { %533 = vmatpush1.bf16.msra.mxu1 %v532_v17 }
  0x4a   :  { %535 = vmatprep.subr.bf16.mxu1 %v534_v18 }
  0x4d   :  { %537 = vmatpush1.bf16.msra.mxu1 %v536_v23 }
  0x4e   :  { %539 = vmatprep.subr.bf16.mxu1 %v538_v24 }
  0x51   :  { %541 = vmatpush1.bf16.msra.mxu1 %v540_v29 }
  0x52   :  { %543 = vmatprep.subr.bf16.mxu1 %v542_v30 }
  0x55   :  { %545 = vmatpush1.bf16.msra.mxu1 %v544_v33 }
  0x56   :  { %547 = vmatprep.subr.bf16.mxu1 %v546_v36 }
  0x59   :  { %549 = vmatpush1.bf16.msra.mxu1 %v548_v39 }
  0xac   :  { %v387_v3 = vpop.permute.xlu0 %386 }
  0xad   :  { %v392_v4 = vrot.slane %v387_v3, %v221_v42 }
  0xf6   :  { %v212_v47 = vpop.f32.mrb[0].mxu0 }
  0xf7   :  { %v229_v48 = vadd.f32 %v222_v45, %v212_v47  ;;  %v214_v49 = vpop.f32.mrb[1].mxu0 }
  0xf8   :  { %v230_v50 = vadd.f32 %v226_v46, %v214_v49 }
  0xf9   :  { %v231_v52 = vmax.f32 %v229_v48, 0.0 }
  0xfa   :  { %v232_v51 = vmax.f32 %v230_v50, 0.0 }
  0xfc   :  { %373 = vmatprep.mubr.f32.mxu1 %v232_v51 }
  0xfd   :  { %374 = vmatmul.mubr.f32.vlgmr.msra.gmra.mrb[0].mxu1 %v231_v52 }
 0x1d0   :  { %v375_v60 = vpop.f32.mrb[0].mxu1 }
 0x1d1   :  { %v376_v61 = vadd.f32 %v375_v60, %v302_v58  ;;  %v377_v62 = vpop.f32.mrb[1].mxu1 }
 0x1d2   :  { %v378_v63 = vadd.f32 %v377_v62, %v306_v59 }
 0x1d3   :  { %v380_v1 = vmax.f32 %v376_v61, 0.0 }
 0x1d4   :  { %v381_v0 = vmax.f32 %v378_v63, 0.0 }
 0x1d6   :  { %404 = vmatprep.subr.mxu0 %v381_v0 }
 0x1d7   :  { %405 = vmatpush1.xpose.msra.mxu0 %v380_v1 }
 0x1da   :  { %469 = vmatmul.mubr.f32.vlgmr.msra.gmra.mrb[2].mxu0 %v397_v2 }
 0x2ad   :  { %v470_v5 = vpop.f32.mrb[2].mxu0 }
 0x2ae   :  { %v471_v6 = vadd.f32 %v470_v5, %v392_v4  ;;  %v472_v7 = vpop.f32.mrb[3].mxu0 }
 0x2b0   :  { %475 = vst.msk [vmem:[%s688_s9] sm:$0x1] %vm474_vm3, %v471_v6 }
 0x2b1   :  { %480 = vsyncpa [#allocation4], 1 }

</bundles_post_ra>
